<compile_context>
chip_gen: v7x
topology: tpu7x:2x2x1
jax: 0.10.0
libtpu: 0.0.40
codegen_flags: <defaults>
</compile_context>

<pallas_src>
import functools
import math

import jax
import jax.numpy as jnp
from jax.experimental import pallas as pl
from jax.experimental.pallas import tpu as pltpu


def _canny_kernel(x_ref, o_ref, *, Hs, W, k, thr):
    # Block layout: (R, L) with R = planes_per_block * Hs whole "super rows"
    # stacked on the sublane axis and L = k * W on the lane axis (k packed
    # image rows per super row; k == 1 means unpacked).
    x = x_ref[...]
    R, L = x.shape

    # ---- tiny broadcast masks (never full (R, L) int32 arrays) -------------
    rsub = jax.lax.broadcasted_iota(jnp.int32, (R, 1), 0)
    r_in = rsub % Hs                      # super-row index inside its plane
    row_first = r_in == 0                 # (R, 1)
    row_last = r_in == (Hs - 1)           # (R, 1)

    jlane = jax.lax.broadcasted_iota(jnp.int32, (1, L), 1)
    if k > 1:
        w = jlane % W                     # image column of this lane
        seg_first = jlane < W             # first packed row of the super row
        seg_last = jlane >= (L - W)       # last packed row of the super row
    else:
        w = jlane
    lt_ok = w > 0                         # x[., w-1] exists
    rt_ok = w < (W - 1)                   # x[., w+1] exists

    zero = jnp.zeros((), x.dtype)

    # ---- vertical neighbours (zero outside the plane) ----------------------
    def shift_up(v):                      # -> x[h-1, w]
        if k > 1:
            v_w = pltpu.roll(v, shift=W, axis=1)        # within the super row
            v_wrap = pltpu.roll(v_w, shift=1, axis=0)   # from previous super row
            return jnp.where(seg_first,
                             jnp.where(row_first, zero, v_wrap), v_w)
        return jnp.where(row_first, zero, pltpu.roll(v, shift=1, axis=0))

    def shift_dn(v):                      # -> x[h+1, w]
        if k > 1:
            v_w = pltpu.roll(v, shift=L - W, axis=1)
            v_wrap = pltpu.roll(v_w, shift=R - 1, axis=0)
            return jnp.where(seg_last,
                             jnp.where(row_last, zero, v_wrap), v_w)
        return jnp.where(row_last, zero, pltpu.roll(v, shift=R - 1, axis=0))

    # ---- horizontal neighbours (zero outside the plane) --------------------
    def shift_lt(v):                      # -> v[h, w-1]
        return jnp.where(lt_ok, pltpu.roll(v, shift=1, axis=1), zero)

    def shift_rt(v):                      # -> v[h, w+1]
        return jnp.where(rt_ok, pltpu.roll(v, shift=L - 1, axis=1), zero)

    x_up = shift_up(x)
    x_dn = shift_dn(x)
    # OR over directions == (max |d| >= thr); accumulate a running max so each
    # shifted copy dies right after its use (small VMEM live set).
    m = jnp.abs(x_up - x_dn)                                      # filter_90
    m = jnp.maximum(m, jnp.abs(shift_lt(x_up) - shift_rt(x_dn)))  # filter_45
    m = jnp.maximum(m, jnp.abs(shift_rt(x_up) - shift_lt(x_dn)))  # filter_135
    m = jnp.maximum(m, jnp.abs(shift_lt(x) - shift_rt(x)))        # filter_0
    o_ref[...] = (m >= thr).astype(o_ref.dtype)


def _tpu_vmem_limit_bytes():
    """Generation-aware VMEM budget (~3/4 of physical) with a safe fallback."""
    cap = None
    try:
        cap = getattr(pltpu.get_tpu_info(), "vmem_capacity_bytes", None)
    except Exception:
        cap = None
    if not cap:
        cap = 64 * 1024 * 1024            # conservative (v7x-sized) default
    return (3 * int(cap)) // 4


def canny_detector(imgs, threshold=15.0):
    """JAX/Pallas equivalent of CannyDetector.forward.

    imgs: (B, C, H, W) float array.  Returns (B, C, H, W) of 0.0 / 1.0 edge
    flags with the same dtype as imgs.
    """
    thr = float(threshold) / 255.0
    B, C, H, W = imgs.shape
    N = B * C

    # Lane-dense packing for narrow images: (H, W) -> (H/k, k*W), contiguous
    # (free) reshape, lane axis becomes a multiple of 128.
    k = 1
    if W < 128:
        k0 = 128 // math.gcd(W, 128)      # smallest k with (k*W) % 128 == 0
        if H % k0 == 0:
            k = k0
    Hs = H // k
    L = k * W
    total_rows = N * Hs
    x2d = imgs.reshape(total_rows, L)

    # Block sizing: whole planes per block, sized against the VMEM budget
    # (in/out double buffers + ~6 live block-sized temporaries ~ 12x block).
    vmem_limit = _tpu_vmem_limit_bytes()
    dtype_bytes = jnp.dtype(imgs.dtype).itemsize
    plane_bytes = Hs * L * dtype_bytes
    target_bytes = max(512 * 1024, vmem_limit // 12)

    tb = max(1, min(N, target_bytes // max(1, plane_bytes)))
    if N > 1:
        # Keep >= 2 balanced grid steps so both v7x TensorCores get work.
        steps = max(2, -(-N // tb))
        tb = -(-N // steps)
    # Sublane constraint: block rows must be a multiple of 8 unless the block
    # spans the whole row axis.  Block boundaries always stay on plane
    # boundaries, so the roll wrap rows are exactly the masked padding rows.
    if (tb * Hs) % 8 != 0 and tb != N:
        step = 8 // math.gcd(Hs, 8)
        tb = (tb // step) * step
        if tb == 0:
            tb = step if step <= N else N
    R = tb * Hs
    grid = -(-N // tb)

    numel = int(imgs.size)
    out2d = pl.pallas_call(
        functools.partial(_canny_kernel, Hs=Hs, W=W, k=k, thr=thr),
        out_shape=jax.ShapeDtypeStruct((total_rows, L), imgs.dtype),
        grid=(grid,),
        in_specs=[pl.BlockSpec((R, L), lambda i: (i, 0))],
        out_specs=pl.BlockSpec((R, L), lambda i: (i, 0)),
        compiler_params=pltpu.CompilerParams(
            dimension_semantics=("parallel",),
            vmem_limit_bytes=int(vmem_limit)),
        cost_estimate=pl.CostEstimate(
            flops=20 * numel,
            transcendentals=0,
            bytes_accessed=2 * numel * dtype_bytes),
    )(x2d)
    return out2d.reshape(B, C, H, W)


def _canny_reference(imgs, threshold=15.0):
    """Pure-jnp reference (same math as the PyTorch module, for verification)."""
    thr = float(threshold) / 255.0
    xp = jnp.pad(imgs, ((0, 0), (0, 0), (1, 1), (1, 1)))
    H, W = imgs.shape[-2:]
    d0 = xp[..., 1:H + 1, 0:W] - xp[..., 1:H + 1, 2:W + 2]
    d45 = xp[..., 0:H, 0:W] - xp[..., 2:H + 2, 2:W + 2]
    d90 = xp[..., 0:H, 1:W + 1] - xp[..., 2:H + 2, 1:W + 1]
    d135 = xp[..., 0:H, 2:W + 2] - xp[..., 2:H + 2, 0:W]
    bits = sum((jnp.abs(d) >= thr).astype(imgs.dtype)
               for d in (d0, d45, d90, d135))
    return jnp.minimum(bits, 1.0).astype(imgs.dtype)


if __name__ == "__main__":
    def _check(shape, key):
        imgs = jax.random.uniform(key, shape, dtype=jnp.float32)
        out = jax.block_until_ready(canny_detector(imgs, threshold=15.0))
        ref = _canny_reference(imgs, threshold=15.0)
        assert out.shape == imgs.shape and out.dtype == imgs.dtype
        assert jnp.array_equal(out, ref), f"Pallas mismatch for shape {shape}"

    key = jax.random.PRNGKey(0)
    k0, k1, k2 = jax.random.split(key, 3)
    _check((2, 4, 16, 16), k0)    # lane-packed (k=8), two balanced blocks
    _check((1, 6, 16, 16), k1)    # lane-packed, ragged last block + tb fix-up
    _check((1, 3, 12, 256), k2)   # unpacked (W>=128), ragged last block
    print("KERNEL_OK")
</pallas_src>

<mosaic_0001>
module attributes {stable_mosaic.version = 11 : i64} {
  func.func @_canny_kernel(%arg0: i32, %arg1: memref<8x128xf32, #tpu.memory_space<vmem>>, %arg2: memref<8x128xf32, #tpu.memory_space<vmem>>) attributes {dimension_semantics = [#tpu.dimension_semantics<parallel>], iteration_bounds = array<i64: 2>, scalar_prefetch = 0 : i64, scratch_operands = 0 : i64, tpu.core_type = #tpu.core_type<tc>, window_params = [{transform_indices = @transform_0, window_bounds = array<i64: 8, 128>}, {transform_indices = @transform_1, window_bounds = array<i64: 8, 128>}]} {
    %c0 = arith.constant 0 : index
    %c0_0 = arith.constant 0 : index
    %0 = vector.load %arg1[%c0, %c0_0] : memref<8x128xf32, #tpu.memory_space<vmem>>, vector<8x128xf32>
    %1 = tpu.iota {dimensions = array<i32: 0>} : vector<8x1xi32>
    %c2_i32 = arith.constant 2 : i32
    %c0_i32 = arith.constant 0 : i32
    %2 = arith.cmpi eq, %c2_i32, %c0_i32 : i32
    %c1_i32 = arith.constant 1 : i32
    %3 = arith.select %2, %c1_i32, %c2_i32 : i32
    %4 = vector.broadcast %3 : i32 to vector<8x1xi32>
    %5 = arith.remsi %1, %4 : vector<8x1xi32>
    %c0_i32_1 = arith.constant 0 : i32
    %6 = vector.broadcast %c0_i32_1 : i32 to vector<8x1xi32>
    %7 = arith.cmpi ne, %5, %6 : vector<8x1xi32>
    %c0_i32_2 = arith.constant 0 : i32
    %8 = vector.broadcast %c0_i32_2 : i32 to vector<8x1xi32>
    %9 = arith.cmpi slt, %5, %8 : vector<8x1xi32>
    %c0_i32_3 = arith.constant 0 : i32
    %10 = arith.cmpi slt, %3, %c0_i32_3 : i32
    %11 = vector.broadcast %10 : i1 to vector<8x1xi1>
    %12 = vector.broadcast %11 : vector<8x1xi1> to vector<8x1xi1>
    %13 = arith.xori %9, %12 : vector<8x1xi1>
    %14 = arith.andi %13, %7 : vector<8x1xi1>
    %15 = vector.broadcast %3 : i32 to vector<8x1xi32>
    %16 = arith.addi %5, %15 : vector<8x1xi32>
    %17 = arith.select %14, %16, %5 : vector<8x1xi1>, vector<8x1xi32>
    %c0_i32_4 = arith.constant 0 : i32
    %18 = vector.broadcast %c0_i32_4 : i32 to vector<8x1xi32>
    %19 = arith.cmpi eq, %17, %18 : vector<8x1xi32>
    %c1_i32_5 = arith.constant 1 : i32
    %20 = vector.broadcast %c1_i32_5 : i32 to vector<8x1xi32>
    %21 = arith.cmpi eq, %17, %20 : vector<8x1xi32>
    %22 = tpu.iota {dimensions = array<i32: 1>} : vector<1x128xi32>
    %c16_i32 = arith.constant 16 : i32
    %c0_i32_6 = arith.constant 0 : i32
    %23 = arith.cmpi eq, %c16_i32, %c0_i32_6 : i32
    %c1_i32_7 = arith.constant 1 : i32
    %24 = arith.select %23, %c1_i32_7, %c16_i32 : i32
    %25 = vector.broadcast %24 : i32 to vector<1x128xi32>
    %26 = arith.remsi %22, %25 : vector<1x128xi32>
    %c0_i32_8 = arith.constant 0 : i32
    %27 = vector.broadcast %c0_i32_8 : i32 to vector<1x128xi32>
    %28 = arith.cmpi ne, %26, %27 : vector<1x128xi32>
    %c0_i32_9 = arith.constant 0 : i32
    %29 = vector.broadcast %c0_i32_9 : i32 to vector<1x128xi32>
    %30 = arith.cmpi slt, %26, %29 : vector<1x128xi32>
    %c0_i32_10 = arith.constant 0 : i32
    %31 = arith.cmpi slt, %24, %c0_i32_10 : i32
    %32 = vector.broadcast %31 : i1 to vector<1x128xi1>
    %33 = vector.broadcast %32 : vector<1x128xi1> to vector<1x128xi1>
    %34 = arith.xori %30, %33 : vector<1x128xi1>
    %35 = arith.andi %34, %28 : vector<1x128xi1>
    %36 = vector.broadcast %24 : i32 to vector<1x128xi32>
    %37 = arith.addi %26, %36 : vector<1x128xi32>
    %38 = arith.select %35, %37, %26 : vector<1x128xi1>, vector<1x128xi32>
    %c16_i32_11 = arith.constant 16 : i32
    %39 = vector.broadcast %c16_i32_11 : i32 to vector<1x128xi32>
    %40 = arith.cmpi slt, %22, %39 : vector<1x128xi32>
    %c112_i32 = arith.constant 112 : i32
    %41 = vector.broadcast %c112_i32 : i32 to vector<1x128xi32>
    %42 = arith.cmpi sge, %22, %41 : vector<1x128xi32>
    %c0_i32_12 = arith.constant 0 : i32
    %43 = vector.broadcast %c0_i32_12 : i32 to vector<1x128xi32>
    %44 = arith.cmpi sgt, %38, %43 : vector<1x128xi32>
    %c15_i32 = arith.constant 15 : i32
    %45 = vector.broadcast %c15_i32 : i32 to vector<1x128xi32>
    %46 = arith.cmpi slt, %38, %45 : vector<1x128xi32>
    %c16_i32_13 = arith.constant 16 : i32
    %47 = tpu.dynamic_rotate %0 by %c16_i32_13 dim 1 : vector<8x128xf32>, i32 -> vector<8x128xf32>
    %c1_i32_14 = arith.constant 1 : i32
    %48 = tpu.dynamic_rotate %47 by %c1_i32_14 dim 0 : vector<8x128xf32>, i32 -> vector<8x128xf32>
    %cst = arith.constant 0.000000e+00 : f32
    %49 = vector.shape_cast %19 : vector<8x1xi1> to vector<8x1xi1>
    %50 = vector.broadcast %49 : vector<8x1xi1> to vector<8x128xi1>
    %51 = vector.broadcast %cst : f32 to vector<8x128xf32>
    %52 = arith.select %50, %51, %48 : vector<8x128xi1>, vector<8x128xf32>
    %53 = vector.shape_cast %40 : vector<1x128xi1> to vector<1x128xi1>
    %54 = vector.broadcast %53 : vector<1x128xi1> to vector<8x128xi1>
    %55 = arith.select %54, %52, %47 : vector<8x128xi1>, vector<8x128xf32>
    %c112_i32_15 = arith.constant 112 : i32
    %56 = tpu.dynamic_rotate %0 by %c112_i32_15 dim 1 : vector<8x128xf32>, i32 -> vector<8x128xf32>
    %c7_i32 = arith.constant 7 : i32
    %57 = tpu.dynamic_rotate %56 by %c7_i32 dim 0 : vector<8x128xf32>, i32 -> vector<8x128xf32>
    %cst_16 = arith.constant 0.000000e+00 : f32
    %58 = vector.shape_cast %21 : vector<8x1xi1> to vector<8x1xi1>
    %59 = vector.broadcast %58 : vector<8x1xi1> to vector<8x128xi1>
    %60 = vector.broadcast %cst_16 : f32 to vector<8x128xf32>
    %61 = arith.select %59, %60, %57 : vector<8x128xi1>, vector<8x128xf32>
    %62 = vector.shape_cast %42 : vector<1x128xi1> to vector<1x128xi1>
    %63 = vector.broadcast %62 : vector<1x128xi1> to vector<8x128xi1>
    %64 = arith.select %63, %61, %56 : vector<8x128xi1>, vector<8x128xf32>
    %65 = arith.subf %55, %64 : vector<8x128xf32>
    %66 = math.absf %65 : vector<8x128xf32>
    %c1_i32_17 = arith.constant 1 : i32
    %67 = tpu.dynamic_rotate %55 by %c1_i32_17 dim 1 : vector<8x128xf32>, i32 -> vector<8x128xf32>
    %cst_18 = arith.constant 0.000000e+00 : f32
    %68 = vector.shape_cast %44 : vector<1x128xi1> to vector<1x128xi1>
    %69 = vector.broadcast %68 : vector<1x128xi1> to vector<8x128xi1>
    %70 = vector.broadcast %cst_18 : f32 to vector<8x128xf32>
    %71 = arith.select %69, %67, %70 : vector<8x128xi1>, vector<8x128xf32>
    %c127_i32 = arith.constant 127 : i32
    %72 = tpu.dynamic_rotate %64 by %c127_i32 dim 1 : vector<8x128xf32>, i32 -> vector<8x128xf32>
    %cst_19 = arith.constant 0.000000e+00 : f32
    %73 = vector.shape_cast %46 : vector<1x128xi1> to vector<1x128xi1>
    %74 = vector.broadcast %73 : vector<1x128xi1> to vector<8x128xi1>
    %75 = vector.broadcast %cst_19 : f32 to vector<8x128xf32>
    %76 = arith.select %74, %72, %75 : vector<8x128xi1>, vector<8x128xf32>
    %77 = arith.subf %71, %76 : vector<8x128xf32>
    %78 = math.absf %77 : vector<8x128xf32>
    %79 = arith.maximumf %66, %78 : vector<8x128xf32>
    %c127_i32_20 = arith.constant 127 : i32
    %80 = tpu.dynamic_rotate %55 by %c127_i32_20 dim 1 : vector<8x128xf32>, i32 -> vector<8x128xf32>
    %cst_21 = arith.constant 0.000000e+00 : f32
    %81 = vector.shape_cast %46 : vector<1x128xi1> to vector<1x128xi1>
    %82 = vector.broadcast %81 : vector<1x128xi1> to vector<8x128xi1>
    %83 = vector.broadcast %cst_21 : f32 to vector<8x128xf32>
    %84 = arith.select %82, %80, %83 : vector<8x128xi1>, vector<8x128xf32>
    %c1_i32_22 = arith.constant 1 : i32
    %85 = tpu.dynamic_rotate %64 by %c1_i32_22 dim 1 : vector<8x128xf32>, i32 -> vector<8x128xf32>
    %cst_23 = arith.constant 0.000000e+00 : f32
    %86 = vector.shape_cast %44 : vector<1x128xi1> to vector<1x128xi1>
    %87 = vector.broadcast %86 : vector<1x128xi1> to vector<8x128xi1>
    %88 = vector.broadcast %cst_23 : f32 to vector<8x128xf32>
    %89 = arith.select %87, %85, %88 : vector<8x128xi1>, vector<8x128xf32>
    %90 = arith.subf %84, %89 : vector<8x128xf32>
    %91 = math.absf %90 : vector<8x128xf32>
    %92 = arith.maximumf %79, %91 : vector<8x128xf32>
    %c1_i32_24 = arith.constant 1 : i32
    %93 = tpu.dynamic_rotate %0 by %c1_i32_24 dim 1 : vector<8x128xf32>, i32 -> vector<8x128xf32>
    %cst_25 = arith.constant 0.000000e+00 : f32
    %94 = vector.shape_cast %44 : vector<1x128xi1> to vector<1x128xi1>
    %95 = vector.broadcast %94 : vector<1x128xi1> to vector<8x128xi1>
    %96 = vector.broadcast %cst_25 : f32 to vector<8x128xf32>
    %97 = arith.select %95, %93, %96 : vector<8x128xi1>, vector<8x128xf32>
    %c127_i32_26 = arith.constant 127 : i32
    %98 = tpu.dynamic_rotate %0 by %c127_i32_26 dim 1 : vector<8x128xf32>, i32 -> vector<8x128xf32>
    %cst_27 = arith.constant 0.000000e+00 : f32
    %99 = vector.shape_cast %46 : vector<1x128xi1> to vector<1x128xi1>
    %100 = vector.broadcast %99 : vector<1x128xi1> to vector<8x128xi1>
    %101 = vector.broadcast %cst_27 : f32 to vector<8x128xf32>
    %102 = arith.select %100, %98, %101 : vector<8x128xi1>, vector<8x128xf32>
    %103 = arith.subf %97, %102 : vector<8x128xf32>
    %104 = math.absf %103 : vector<8x128xf32>
    %105 = arith.maximumf %92, %104 : vector<8x128xf32>
    %cst_28 = arith.constant 0.0588235296 : f32
    %106 = vector.broadcast %cst_28 : f32 to vector<8x128xf32>
    %107 = arith.cmpf oge, %105, %106 : vector<8x128xf32>
    %108 = arith.extui %107 : vector<8x128xi1> to vector<8x128xi32>
    %109 = arith.sitofp %108 : vector<8x128xi32> to vector<8x128xf32>
    %c0_29 = arith.constant 0 : index
    %c0_30 = arith.constant 0 : index
    %110 = vector.load %arg2[%c0_29, %c0_30] : memref<8x128xf32, #tpu.memory_space<vmem>>, vector<8x128xf32>
    tpu.vector_store %arg2[%c0_29, %c0_30], %109 {strides = array<i32>} : memref<8x128xf32, #tpu.memory_space<vmem>>, vector<8x128xf32>,
    return
  }
  func.func @transform_0(%arg0: i32) -> (i32, i32) {
    %c0_i32 = arith.constant 0 : i32
    %c0_i32_0 = arith.constant 0 : i32
    return %arg0, %c0_i32 : i32, i32
  }
  func.func @transform_1(%arg0: i32) -> (i32, i32) {
    %c0_i32 = arith.constant 0 : i32
    %c0_i32_0 = arith.constant 0 : i32
    return %arg0, %c0_i32 : i32, i32
  }
}

</mosaic_0001>

<bundles_post_ra>
// kernel: tpu_custom_call.1
= control target key start
LH: loop header
LB: loop body
LE: loop exit
PB: predicated region body
PF: predicated region fallthrough
CT: control target
= control target key end

     0   :  { %6 = vsyncpa [#allocation3], 0  ;;  %s663_s0 = inlined_call_operand.hbm [shape: f32[16,128], index: 0, kind: input, shape index: {}]   ;;  %s664_s1 = inlined_call_operand.hbm [shape: f32[16,128], index: 1, kind: output, shape index: {}]  }
   0x1   :  { %8 = vsyncpa [#allocation3 + $0x1], 0 }
   0x2   :  { %9 = vsyncpa [#allocation4], 0 }
   0x3   :  { %11 = vsyncpa [#allocation4 + $0x1], 0  ;;  %s488_s6 = smov 0   ;;  %s490_s7 = smov 0  }
   0x4   :  { %s492_s8 = smov 0   ;;  %s494_s9 = smov 0  }
   0x5 LB: > { %s509_s10 = sadd.s32 4294967295, %s469_s9   ;;  %s306_s11 = sadd.s32 4294967294, %s469_s9   ;;  %s469_s9 = sphi %s494_s9, %s681_s9   ;;  %s465_s8 = sphi %s492_s8, %s680_s8   ;;  %s461_s7 = sphi %s490_s7, %s679_s7   ;;  %s457_s6 = sphi %s488_s6, %s678_s6  }
   0x6   : > { %s513_s12 = sadd.s32 1, %s469_s9   ;;  %s24_s13 = sadd.s32 1, %s465_s8 }
   0x7   : > { %s21_s14 = ssub.s32 %s469_s9, %s513_s12  ;;  %p31_p0 = scmp.ne.s32.totalorder %s465_s8, %s461_s7 }
   0x8   : > { %p22_p1 = scmp.eq.s32.totalorder %s21_s14, 0  ;;  %p32_p2 = scmp.eq.s32.totalorder %s469_s9, 0 }
   0x9   : > { %p37_p3 = scmp.ne.s32.totalorder %s461_s7, %s457_s6  ;;  %p38_p4 = scmp.eq.s32.totalorder %s509_s10, 0 }
   0xa   : > { %s525_s15 = scalar_select %p22_p1, %s465_s8, %s24_s13  }
   0xb   : > { %p527_p5 = por %p32_p2, %p31_p0  ;;  %p531_p6 = por %p38_p4, %p37_p3 }
   0xc   : > { %p61_p7 = scmp.eq.s32.totalorder %s509_s10, 1  ;;  %p67_p8 = scmp.eq.s32.totalorder %s306_s11, 1 }
   0xd   : > { %p331_p10 = scmp.lt.s32.totalorder %s469_s9, 2  ;;  %s87_s20 = sand.u32 1, %s465_s8  }
   0xe   : > { %p538_p11 = por %p61_p7, %p31_p0  ;;  %p542_p12 = por %p67_p8, %p37_p3 }
   0xf   : > { %s310_s21 = sshll.u32 %s469_s9, 7  ;;  %s309_s22 = sshll.u32 %s87_s20, 3 }
  0x10   : > { %s668_s18 = scalar_select %p538_p11, 1, 0 }
  0x11   : > { %s669_s19 = scalar_select %p542_p12, 1, 0 }
  0x12   : > { %s551_s25 = scalar_lea.hbm %s663_s0, %s310_s21  ;;  %s91_s26 = scalar_lea.vmem [#allocation2], %s309_s22 }
  0x13   : > { %s98_s27 = sshll.u32 %s91_s26, 4  ;;  %p555_p13 = pnand %p331_p10, %p527_p5  ;;  %s559_s27 = int_to_ptr.vmem [resolvable:$true] %s98_s27 }
  0x14   : > { %s88_s29 = scalar_lea.sflag [#allocation3], %s87_s20  ;;  %s370_s30 = scalar_lea.hbm %s551_s25, 128 }
  0x15   : > { %p371_p2 = scmp.ne.s32.totalorder %s551_s25, %s370_s30  ;;  %p372_p3 = pneg %p555_p13 }
  0x16   : > { %s375_s4 = scalar_lea.hbm %s663_s0, 256  ;;  %p376_p5 = scmp.lt.u32.totalorder %s551_s25, %s663_s0 }
  0x17   : > { %p373_p4 = pnand %p372_p3, %p371_p2  ;;  %p377_p8 = scmp.lt.u32.totalorder %s375_s4, %s370_s30 }
  0x18   : > { %p379_p9 = scmp.lt.u32.totalorder %s370_s30, %s551_s25 }
  0x19   : > { %p374_p7 = pneg %p373_p4  ;;  %p378_p10 = por %p377_p8, %p376_p5 }
  0x1b   : > { %p380_p0 = por %p379_p9, %p378_p10 }
  0x1d   : > { %p381_p1 = pnand %p380_p0, %p374_p7 }
  0x1f   : > { %384 = shalt.err (!%p381_p1)
}
  0x20   : > { %s385_s13 = scalar_lea.vmem %s559_s27, 128  ;;  %s471_s14 = smov [#allocation2]  }
  0x21   : > { %p386_p2 = scmp.ne.s32.totalorder %s559_s27, %s385_s13  ;;  %s390_s16 = sshll.u32 %s471_s14, 4  ;;  %s391_s16 = int_to_ptr.vmem [resolvable:$false] %s390_s16 }
  0x22   : > { %s392_s20 = scalar_lea.vmem %s391_s16, 256  ;;  %p393_p11 = scmp.lt.s32.totalorder %s559_s27, %s391_s16 }
  0x23   : > { %p388_p4 = pnand %p386_p2, %p372_p3  ;;  %p394_p5 = scmp.lt.s32.totalorder %s392_s20, %s385_s13 }
  0x25   : > { %p389_p12 = pneg %p388_p4  ;;  %p395_p8 = por %p394_p5, %p393_p11 }
  0x27   : > { %p396_p9 = pnand %p395_p8, %p389_p12 }
  0x29   : > { %399 = shalt.err (!%p396_p9)
}
  0x2a   : > { %326 = dma.hbm_to_vmem [thread:$0]  (!%p555_p13), %s551_s25, 128, %s559_s27, %s88_s29  }
  0x2b   : > { %p671_p0 = scmp.lt.s32.totalorder %s469_s9, 3  ;;  %p672_p1 = scmp.ge.s32.totalorder %s469_s9, 1 }
  0x2d   : > { %p104_p3 = pnand %p672_p1, %p671_p0 }
  0x2e   : > { %s593_s21 = sand.u32 (!%p104_p3), 1, %s461_s7  }
  0x2f   : > { %107 = sbr.rel (%p104_p3) target bundleno = 325 (0x145), region = 24  ;;  %s312_s22 = sshll.u32 (!%p104_p3), %s593_s21, 3 }
  0x30   : > { %s110_s23 = scalar_lea.sflag (!%p104_p3), [#allocation3], %s593_s21  ;;  %s113_s24 = scalar_lea.vmem (!%p104_p3), [#allocation2], %s312_s22 }
  0x36   : > { %445 = dma.done.wait (%p531_p6), %s110_s23, 128  }
  0x37   : > { %447 = vsyncadd (%p531_p6), %s110_s23, 4294967168  ;;  %v132_v0 = vld [vmem:[%s113_s24] sm:$0xff]  ;;  %s472_s25 = smov 16   ;;  %s473_s26 = smov 112   ;;  %v133_v1 = vlaneseq  ;;  %v476_v32 = vmov 0.0  }
  0x38   : > { %167 = vrot.lane.b32.xlu0 %v132_v0, %s472_s25  ;;  %s474_s17 = smov 127   ;;  %s475_s27 = smov 1  }
  0x39   : > { %v134_v2 = vshrl.u32 %v133_v1, 7  ;;  %v150_v4 = vand.u32 127, %v133_v1  ;;  %s316_s28 = sshll.u32 %s509_s10, 7  ;;  %s131_s29 = scalar_lea.vmem [#allocation5], %s312_s22 }
  0x3a   : > { %s236_s30 = sshll.u32 %s131_s29, 4  ;;  %s619_s4 = scalar_lea.hbm %s664_s1, %s316_s28  ;;  %s621_s30 = int_to_ptr.vmem [resolvable:$true] %s236_s30 }
  0x3b   : > { %v139_v3 = vand.u32 1, %v134_v2  ;;  %vm163_vm1 = vcmp.lt.s32.totalorder %v150_v4, 16  ;;  %vm164_vm3 = vcmp.ge.s32.totalorder %v150_v4, 112  ;;  %v155_v14 = vand.u32 15, %v150_v4  ;;  %s223_s10 = scalar_lea.sflag [#allocation4], %s593_s21  ;;  %s400_s5 = scalar_lea.vmem %s621_s30, 128 }
  0x3c   : > { %176 = vrot.lane.b32.xlu0 %v132_v0, %s473_s26  ;;  %p401_p6 = scmp.ne.s32.totalorder %s621_s30, %s400_s5  ;;  %p675_p11 = scmp.ne.s32.totalorder %s668_s18, 0 }
  0x3d   : > { %vm147_vm0 = vcmp.eq.s32.totalorder %v139_v3, 0  ;;  %vm148_vm2 = vcmp.eq.s32.totalorder %v139_v3, 1  ;;  %vm603_vm4 = vcmp.gt.s32.totalorder %v155_v14, 0  ;;  %vm166_vm5 = vcmp.lt.s32.totalorder %v155_v14, 15  ;;  %s477_s11 = smov [#allocation5]  }
  0x3e   : > { %p402_p12 = pnand %p401_p6, %p675_p11  ;;  %s404_s13 = sshll.u32 %s477_s11, 4  ;;  %s405_s13 = int_to_ptr.vmem [resolvable:$false] %s404_s13 }
  0x3f   : > { %s406_s14 = scalar_lea.vmem %s405_s13, 256  ;;  %p407_p7 = scmp.lt.s32.totalorder %s621_s30, %s405_s13 }
  0x40   : > { %p403_p13 = pneg %p402_p12  ;;  %p408_p10 = scmp.lt.s32.totalorder %s406_s14, %s400_s5 }
  0x42   : > { %p409_p2 = por %p408_p10, %p407_p7 }
  0x44   : > { %p410_p4 = pnand %p409_p2, %p403_p13 }
  0xaa   : > { %v168_v5 = vpop.permute.xlu0 %167 }
  0xab   : > { %v169_v6 = vrot.slane %v168_v5, 7 }
  0xad   : > { %v172_v7 = vsel %vm147_vm0, 0.0, %v169_v6 }
  0xae   : > { %v177_v8 = vpop.permute.xlu0 %176  ;;  %v175_v9 = vsel %vm163_vm1, %v172_v7, %v168_v5 }
  0xaf   : > { %v178_v10 = vrot.slane %v177_v8, 1  ;;  %200 = vrot.lane.b32.xlu0 %v175_v9, %s474_s17  ;;  %187 = vrot.lane.b32.xlu1 %v175_v9, %s475_s27 }
  0xb1   : > { %v181_v11 = vsel %vm148_vm2, 0.0, %v178_v10 }
  0xb2   : > { %v184_v12 = vsel %vm164_vm3, %v181_v11, %v177_v8 }
  0xb3   : > { %192 = vrot.lane.b32.xlu1 %v184_v12, %s474_s17  ;;  %v185_v13 = vsub.f32 %v175_v9, %v184_v12  ;;  %209 = vrot.lane.b32.xlu0 %v132_v0, %s475_s27 }
  0xb7   : > { %203 = vrot.lane.b32.xlu1 %v184_v12, %s475_s27 }
  0xbb   : > { %212 = vrot.lane.b32.xlu1 %v132_v0, %s474_s17 }
 0x121   : > { %v188_v15 = vpop.permute.xlu1 %187  ;;  %v201_v17 = vpop.permute.xlu0 %200 }
 0x122   : > { %v191_v19 = vsel %vm603_vm4, %v188_v15, 0.0  ;;  %v202_v24 = vsel %vm166_vm5, %v201_v17, 0.0 }
 0x125   : > { %v193_v18 = vpop.permute.xlu1 %192  ;;  %v210_v23 = vpop.permute.xlu0 %209 }
 0x126   : > { %v196_v20 = vsel %vm166_vm5, %v193_v18, 0.0  ;;  %v211_v27 = vsel %vm603_vm4, %v210_v23, 0.0 }
 0x127   : > { %v197_v21 = vsub.f32 %v191_v19, %v196_v20 }
 0x129   : > { %v204_v22 = vpop.permute.xlu1 %203  ;;  %452 = vmaxabs.init.f32.vacc0 %v185_v13, %v197_v21 }
 0x12a   : > { %v205_v25 = vsel %vm603_vm4, %v204_v22, 0.0 }
 0x12b   : > { %v206_v26 = vsub.f32 %v202_v24, %v205_v25 }
 0x12d   : > { %v213_v28 = vpop.permute.xlu1 %212 }
 0x12e   : > { %v214_v29 = vsel %vm166_vm5, %v213_v28, 0.0 }
 0x12f   : > { %v215_v30 = vsub.f32 %v211_v27, %v214_v29 }
 0x131   : > { %453 = vmaxabs.f32.vacc0 %v206_v26, %v215_v30 }
 0x133   : > { %v454_v31 = vmovacc.low.even.vacc0 }
 0x135   : > { %vm218_vm6 = vcmp.ge.f32.partialorder %v454_v31, 0.05882353 }
 0x136   : > { %v314_v33 = vsel %vm218_vm6, 1.0, %v476_v32 }
 0x137   : > { %221 = vst [vmem:[%s131_s29] sm:$0xff] %v314_v33 }
 0x138   : > { %413 = shalt.err (!%p410_p4)
}
 0x139   : > { %s414_s16 = scalar_lea.hbm %s619_s4, 128  ;;  %s418_s22 = scalar_lea.hbm %s664_s1, 256 }
 0x13a   : > { %p415_p5 = scmp.ne.s32.totalorder %s619_s4, %s414_s16  ;;  %p419_p0 = scmp.lt.u32.totalorder %s619_s4, %s664_s1 }
 0x13b   : > { %p420_p1 = scmp.lt.u32.totalorder %s418_s22, %s414_s16  ;;  %p422_p6 = scmp.lt.u32.totalorder %s414_s16, %s619_s4 }
 0x13c   : > { %p416_p8 = pnand %p415_p5, %p675_p11 }
 0x13d   : > { %p421_p3 = por %p420_p1, %p419_p0 }
 0x13e   : > { %p417_p9 = pneg %p416_p8 }
 0x13f   : > { %p423_p12 = por %p422_p6, %p421_p3 }
 0x141   : > { %p424_p13 = pnand %p423_p12, %p417_p9 }
 0x143   : > { %427 = shalt.err (!%p424_p13)
}
 0x144   : > { %321 = dma.vmem_to_hbm [thread:$0]  (%p675_p11), %s621_s30, 128, %s619_s4, %s223_s10  }
 0x145 PF: > { %s248_s25 = sand.u32 1, %s457_s6   ;;  %p676_p7 = scmp.ne.s32.totalorder %s669_s19, 0 }
 0x146   : > { %p677_p10 = scmp.ge.s32.totalorder %s469_s9, 2  ;;  %s249_s26 = scalar_lea.sflag [#allocation4], %s248_s25 }
 0x148   : > { %p328_p2 = pnand %p677_p10, %p676_p7 }
 0x14a   : > { %449 = dma.done.wait (!%p328_p2), %s249_s26, 128  }
 0x14b   : > { %451 = vsyncadd (!%p328_p2), %s249_s26, 4294967168  ;;  %p14_p4 = scmp.ge.s32.totalorder %s513_s12, 4   ;;  %s678_s6 = smov %s461_s7 }
 0x14c   : > { %s679_s7 = smov %s465_s8  ;;  %s680_s8 = smov %s525_s15 }
 0x14d   : > { %s681_s9 = smov %s513_s12  ;;  %16 = sbr.rel (!%p14_p4) target bundleno = 5 (0x5), region = 69 }
 0x154   :  { %254 = vsyncpa [#allocation3], 1 }
 0x155   :  { %256 = vsyncpa [#allocation3 + $0x1], 1 }
 0x156   :  { %257 = vsyncpa [#allocation4], 1 }
 0x157   :  { %259 = vsyncpa [#allocation4 + $0x1], 1 }

</bundles_post_ra>
